<compile_context>
chip_gen: v7x
topology: tpu7x:2x2x1
jax: 0.10.0
libtpu: 0.0.40
codegen_flags: <defaults>
</compile_context>

<pallas_src>
import jax
import jax.numpy as jnp
import numpy as np
from jax.experimental import pallas as pl
from jax.experimental.pallas import tpu as pltpu

H1 = 200
H2 = 200


def _round_up(n, m):
    return ((n + m - 1) // m) * m


def _choose_batch_tile(batch8, batch_tile):
    """Pick a sublane-aligned batch tile; even step count when batch is large."""
    if batch8 <= batch_tile:
        return batch8                                   # single grid step
    steps = (batch8 + batch_tile - 1) // batch_tile
    steps += steps % 2                                  # even -> both v7x TCs busy
    return _round_up((batch8 + steps - 1) // steps, 8)


def policy_kernel(x_ref, w_ref, b_ref, o_ref):
    """out = x @ W_eff + b_eff, all operands resident in VMEM."""
    acc = jnp.dot(x_ref[...], w_ref[...],
                  preferred_element_type=jnp.float32)   # default MXU precision, f32 acc
    o_ref[...] = (acc + b_ref[...]).astype(o_ref.dtype)


def fold_params(w1, b1, w2, b2):
    """Fold linear1/linear2 once at init (exact: no nonlinearity in between).

    Weights are stored as (in_features, out_features), i.e. already transposed
    relative to PyTorch's nn.Linear.weight.
    """
    prec = jax.lax.Precision.HIGHEST
    w_eff = jnp.matmul(w1, w2, precision=prec)               # (state_dim, action_dim)
    b_eff = jnp.matmul(b1, w2, precision=prec) + b2          # (1, action_dim)
    return w_eff.astype(jnp.float32), b_eff.astype(jnp.float32)


def policy_forward(x, w_eff, b_eff, *, batch_tile=4096):
    """Single-dot Policy forward.  x: (batch, state_dim) f32."""
    batch, state_dim = x.shape
    action_dim = w_eff.shape[1]

    batch8 = _round_up(batch, 8)
    tile_b = _choose_batch_tile(batch8, batch_tile)
    batch_pad = _round_up(batch8, tile_b)
    if batch_pad != batch:
        # Only awkward batch sizes pay this pass; tile_b is derived from the
        # batch so the common (multiple-of-8) cases skip it entirely.
        x = jnp.pad(x, ((0, batch_pad - batch), (0, 0)))

    grid = (batch_pad // tile_b,)
    out = pl.pallas_call(
        policy_kernel,
        out_shape=jax.ShapeDtypeStruct((batch_pad, action_dim), jnp.float32),
        grid_spec=pltpu.PrefetchScalarGridSpec(
            num_scalar_prefetch=0,
            grid=grid,
            in_specs=[
                # x tile: sublane dim multiple of 8, last dim = full state_dim.
                pl.BlockSpec((tile_b, state_dim), lambda i: (i, 0)),
                # Folded weight + bias: full-array blocks, resident across grid.
                pl.BlockSpec((state_dim, action_dim), lambda i: (0, 0)),
                pl.BlockSpec((1, action_dim), lambda i: (0, 0)),
            ],
            # Narrow (action_dim-wide) output block: 16x less HBM writeback
            # than padding to 128 lanes, and no external slice pass.
            out_specs=pl.BlockSpec((tile_b, action_dim), lambda i: (i, 0)),
        ),
        compiler_params=pltpu.CompilerParams(
            dimension_semantics=("parallel",),
            vmem_limit_bytes=32 * 1024 * 1024,
        ),
    )(x, w_eff, b_eff)
    return out[:batch] if batch_pad != batch else out


def init_policy_params(key, state_dim, action_dim, h1=H1):
    """nn.Linear-style init, weights stored as (in_features, out_features)."""
    k1, k2, k3, k4 = jax.random.split(key, 4)
    bound1 = 1.0 / np.sqrt(state_dim)
    w1 = jax.random.uniform(k1, (state_dim, h1), jnp.float32, -bound1, bound1)
    b1 = jax.random.uniform(k2, (1, h1), jnp.float32, -bound1, bound1)
    bound2 = 1.0 / np.sqrt(h1)
    w2 = jax.random.uniform(k3, (h1, action_dim), jnp.float32, -bound2, bound2)
    b2 = jax.random.uniform(k4, (1, action_dim), jnp.float32, -bound2, bound2)
    return w1, b1, w2, b2
    # Note: linear3 / ReLU exist in Policy.__init__ but are never used in
    # forward -> intentionally omitted.


if __name__ == "__main__":
    state_dim = 32
    action_dim = 8
    batch = 8

    key = jax.random.PRNGKey(0)
    kx, kp = jax.random.split(key)
    x = jax.random.normal(kx, (batch, state_dim), jnp.float32)
    w1, b1, w2, b2 = init_policy_params(kp, state_dim, action_dim)

    w_eff, b_eff = fold_params(w1, b1, w2, b2)               # once, at init
    out = jax.block_until_ready(policy_forward(x, w_eff, b_eff))

    # Pure-JAX reference with the original (unfolded) two-linear structure at
    # full f32 precision.  The kernel's dot runs at default MXU precision
    # (bf16-rounded inputs, f32 accumulation), so tolerance is ~1e-2, which is
    # the standard TPU matmul accuracy envelope for these magnitudes.
    prec = jax.lax.Precision.HIGHEST
    ref = jnp.matmul(jnp.matmul(x, w1, precision=prec) + b1, w2, precision=prec) + b2
    np.testing.assert_allclose(np.asarray(out), np.asarray(ref), rtol=2e-2, atol=2e-2)

    print("KERNEL_OK")
</pallas_src>

<mosaic_0001>
module attributes {stable_mosaic.version = 11 : i64} {
  func.func @policy_kernel(%arg0: i32, %arg1: memref<8x32xf32, #tpu.memory_space<vmem>>, %arg2: memref<32x8xf32, #tpu.memory_space<vmem>>, %arg3: memref<1x8xf32, #tpu.memory_space<vmem>>, %arg4: memref<8x8xf32, #tpu.memory_space<vmem>>) attributes {dimension_semantics = [#tpu.dimension_semantics<parallel>], iteration_bounds = array<i64: 1>, scalar_prefetch = 0 : i64, scratch_operands = 0 : i64, tpu.core_type = #tpu.core_type<tc>, window_params = [{transform_indices = @transform_0, window_bounds = array<i64: 8, 32>}, {pipeline_mode = #tpu.pipeline_mode<synchronous>, transform_indices = @transform_1, window_bounds = array<i64: 32, 8>}, {pipeline_mode = #tpu.pipeline_mode<synchronous>, transform_indices = @transform_2, window_bounds = array<i64: 1, 8>}, {transform_indices = @transform_3, window_bounds = array<i64: 8, 8>}]} {
    %c0 = arith.constant 0 : index
    %c0_0 = arith.constant 0 : index
    %0 = vector.load %arg1[%c0, %c0_0] : memref<8x32xf32, #tpu.memory_space<vmem>>, vector<8x32xf32>
    %c0_1 = arith.constant 0 : index
    %c0_2 = arith.constant 0 : index
    %1 = vector.load %arg2[%c0_1, %c0_2] : memref<32x8xf32, #tpu.memory_space<vmem>>, vector<32x8xf32>
    %cst = arith.constant dense<0.000000e+00> : vector<8x8xf32>
    %2 = tpu.matmul %0, %1, %cst {dimension_numbers = #tpu.dot_dimension_numbers<[1], [0], [0], [1], [0, 0, 1, 1], [], []>} : vector<8x32xf32>, vector<32x8xf32>, vector<8x8xf32> -> vector<8x8xf32>
    %c0_3 = arith.constant 0 : index
    %c0_4 = arith.constant 0 : index
    %3 = vector.load %arg3[%c0_3, %c0_4] : memref<1x8xf32, #tpu.memory_space<vmem>>, vector<1x8xf32>
    %4 = vector.broadcast %3 : vector<1x8xf32> to vector<8x8xf32>
    %5 = arith.addf %2, %4 : vector<8x8xf32>
    %c0_5 = arith.constant 0 : index
    %c0_6 = arith.constant 0 : index
    %6 = vector.load %arg4[%c0_5, %c0_6] : memref<8x8xf32, #tpu.memory_space<vmem>>, vector<8x8xf32>
    tpu.vector_store %arg4[%c0_5, %c0_6], %5 {strides = array<i32>} : memref<8x8xf32, #tpu.memory_space<vmem>>, vector<8x8xf32>,
    return
  }
  func.func @transform_0(%arg0: i32) -> (i32, i32) {
    %c0_i32 = arith.constant 0 : i32
    %c0_i32_0 = arith.constant 0 : i32
    return %arg0, %c0_i32 : i32, i32
  }
  func.func @transform_1(%arg0: i32) -> (i32, i32) {
    %c0_i32 = arith.constant 0 : i32
    %c0_i32_0 = arith.constant 0 : i32
    %c0_i32_1 = arith.constant 0 : i32
    return %c0_i32, %c0_i32_0 : i32, i32
  }
  func.func @transform_2(%arg0: i32) -> (i32, i32) {
    %c0_i32 = arith.constant 0 : i32
    %c0_i32_0 = arith.constant 0 : i32
    %c0_i32_1 = arith.constant 0 : i32
    return %c0_i32, %c0_i32_0 : i32, i32
  }
  func.func @transform_3(%arg0: i32) -> (i32, i32) {
    %c0_i32 = arith.constant 0 : i32
    %c0_i32_0 = arith.constant 0 : i32
    return %arg0, %c0_i32 : i32, i32
  }
}

</mosaic_0001>

<bundles_post_ra>
// kernel: tpu_custom_call.1
= control target key start
LH: loop header
LB: loop body
LE: loop exit
PB: predicated region body
PF: predicated region fallthrough
CT: control target
= control target key end

     0   :  { %v169_v3 = vmov 0.0|0.0   ;;  %vm170_vm0 = vmmov 0   ;;  %v171_v6 = vmov 0.0   ;;  %s223_s0 = inlined_call_operand.vmem [shape: f32[8,32], index: 0, kind: input, shape index: {}]   ;;  %s224_s1 = inlined_call_operand.vmem [shape: f32[32,8], index: 1, kind: input, shape index: {}]   ;;  %s225_s2 = inlined_call_operand.vmem [shape: f32[1,8], index: 2, kind: input, shape index: {}]   ;;  %s226_s3 = inlined_call_operand.hbm [shape: f32[8,8], index: 3, kind: output, shape index: {}]  }
   0x1   :  { %v16_v0 = vld [vmem:[%s224_s1] sm:$0xff]  ;;  %v17_v1 = vld [vmem:[%s224_s1 + $0x8] sm:$0xff]  ;;  %v18_v2 = vld [vmem:[%s224_s1 + $0x10] sm:$0xff]  ;;  %135 = vmatprep.subr.bf16.mxu0 %v169_v3  ;;  %132 = vmatprep.mubr.msk.f32.mxu0 %vm170_vm0, %v171_v6 }
   0x2   :  { %v136_v4 = vpack.c.bf16 %v17_v1, %v16_v0  ;;  %v19_v5 = vld [vmem:[%s224_s1 + $0x18] sm:$0xff] }
   0x3   :  { %8 = vsyncpa [#allocation3], 0  ;;  %v139_v7 = vpack.c.bf16 %v19_v5, %v18_v2  ;;  %v15_v8 = vld [vmem:[%s223_s0] sm:$0xff]  ;;  %vm27_vm1 = vcmask 261120   ;;  %s172_s24 = smov [#allocation2]   ;;  %vm101_vm2 = vcmask 64512  }
   0x4   :  { %137 = vmatpush3.bf16.msra.mxu0 %v136_v4  ;;  %v117_v9 = vld [vmem:[%s225_s2] ss:$0 sm:$0xff]  ;;  %s109_s1 = sshll.u32 %s172_s24, 4  ;;  %s110_s1 = int_to_ptr.vmem [resolvable:$true] %s109_s1 }
   0x5   :  { %138 = vmatprep.subr.bf16.mxu0 %v169_v3  ;;  %s145_s25 = scalar_lea.vmem %s110_s1, 128  ;;  %p150_p1 = scmp.lt.s32.totalorder %s110_s1, %s110_s1 }
   0x6   :  { %p146_p0 = scmp.ne.s32.totalorder %s110_s1, %s145_s25  ;;  %p151_p2 = scmp.lt.s32.totalorder %s145_s25, %s145_s25 }
   0x8   :  { %140 = vmatpush3.bf16.msra.mxu0 %v139_v7  ;;  %p152_p3 = por %p151_p2, %p150_p1 }
   0xa   :  { %p153_p4 = pnand %p152_p3, %p146_p0 }
   0xb   :  { %133 = vmatmul.mubr.msk.f32.vlgmr.msra.gmra.mrb[0].mxu0 %vm27_vm1, %v15_v8 }
  0xde   :  { %v97_v10 = vpop.f32.mrb[0].mxu0 }
  0xdf   :  { %v98_v11 = vadd.f32 %v117_v9, %v97_v10  ;;  %v134_v12 = vpop.f32.mrb[1].mxu0 }
  0xe1   :  { %102 = vst.msk [vmem:[#allocation2] sm:$0xff] %vm101_vm2, %v98_v11 }
  0xe2   :  { %156 = shalt.err (!%p153_p4)
}
  0xe3   :  { %s157_s27 = scalar_lea.hbm %s226_s3, 128 }
  0xe4   :  { %p158_p5 = scmp.ne.s32.totalorder %s226_s3, %s157_s27  ;;  %p161_p6 = scmp.lt.u32.totalorder %s157_s27, %s226_s3 }
  0xe6   :  { %p163_p7 = pnand %p161_p6, %p158_p5 }
  0xe8   :  { %166 = shalt.err (!%p163_p7)
}
  0xe9   :  { %112 = dma.vmem_to_hbm [thread:$0]  %s110_s1, 128, %s226_s3, [#allocation3]  }
  0xea   :  { %167 = dma.done.wait [#allocation3], 128  }
  0xeb   :  { %168 = vsyncadd [#allocation3], 4294967168 }
  0xec   :  { %116 = vsyncpa [#allocation3], 1 }

</bundles_post_ra>
